<compile_context>
chip_gen: v6e
topology: v6e:2x2x1
jax: 0.10.0
libtpu: 0.0.40
codegen_flags: <defaults>
</compile_context>

<pallas_src>
import jax
import jax.numpy as jnp
from jax import lax
from jax.experimental import pallas as pl
from jax.experimental.pallas import tpu as pltpu

EPS = 1e-5


# ----------------------------------------------------------------------------
# Kernel A: one streaming pass over x rows (channels-last):
#   - per-channel per-tile partial sum / sum-of-squares (reduced in wrapper)
#   - 2x2 stride-2 average pool on the VPU, stored as bf16
# ----------------------------------------------------------------------------
def pool_stats_kernel(x_ref, pooled_ref, ssum_ref, ssq_ref):
    # x_ref:      (tile_h, W, C) f32   rows of channels-last images (N*H flattened)
    # pooled_ref: (tile_h//2, W//2, C) bf16
    # ssum_ref:   (1, 1, C) f32        per-tile partial sum
    # ssq_ref:    (1, 1, C) f32        per-tile partial sum of squares
    th, w, c = x_ref.shape
    ho_t, wo = th // 2, w // 2

    # ---- BN batch statistics: per-tile partials (no cross-step carry, so the
    # grid axis is "parallel" and both v7x TensorCores can share the stream) ----
    x = x_ref[...]                                   # (th, w, c) f32
    col = jnp.sum(x, axis=0)                         # (w, c)
    ssum_ref[...] = jnp.sum(col, axis=0, keepdims=True)[None]       # (1,1,c)
    colsq = jnp.sum(x * x, axis=0)                   # (w, c)
    ssq_ref[...] = jnp.sum(colsq, axis=0, keepdims=True)[None]      # (1,1,c)

    # ---- 2x2 / stride-2 average pool (VPU; strided sublane loads) ----
    x_even_w = x_ref[:, pl.ds(0, wo, stride=2), :]   # w = 0, 2, 4, ...
    x_odd_w = x_ref[:, pl.ds(1, wo, stride=2), :]    # w = 1, 3, 5, ...
    xw = x_even_w + x_odd_w                          # (th, wo, c) f32
    xw = xw.reshape(ho_t, 2, wo, c)                  # split the (major) row axis
    # all arithmetic in f32 (v5e VPU has no bf16 ALU); cast only at the store
    pooled_ref[...] = (0.25 * (xw[:, 0] + xw[:, 1])).astype(pooled_ref.dtype)


# ----------------------------------------------------------------------------
# Kernel B: BN-folded 1x1 conv == pooled @ w_folded + b_folded
# bf16 x bf16 operands, f32 MXU accumulation, f32 bias add, f32 output.
# ----------------------------------------------------------------------------
def conv_bias_kernel(p_ref, w_ref, b_ref, o_ref):
    # p_ref: (tile_r, C) bf16, w_ref: (C, Cout) bf16, b_ref: (1, Cout) f32
    acc = jnp.dot(p_ref[...], w_ref[...], preferred_element_type=jnp.float32)
    o_ref[...] = (acc + b_ref[...]).astype(o_ref.dtype)


def _pick_tile(total, multiple, cap):
    """Largest t <= cap with t % multiple == 0 and total % t == 0 (else total)."""
    t = min(total, cap)
    t -= t % multiple
    while t >= multiple:
        if total % t == 0:
            return t
        t -= multiple
    return total


def _vmem_budget():
    """Generation-aware per-tile byte budget and scoped-VMEM limit."""
    try:
        cap = int(pltpu.get_tpu_info().vmem_capacity_bytes)
    except Exception:
        cap = 64 << 20           # conservative fallback == v7x per-core VMEM
    tile_budget = max(2 << 20, min(12 << 20, cap // 10))   # ~12 MiB v5e/v6e, ~6 MiB v7x
    vmem_limit = int(min(cap * 3 // 4, 96 << 20))           # 96 MiB v5e/v6e, 48 MiB v7x
    return tile_budget, vmem_limit


# ----------------------------------------------------------------------------
# Native channels-last entry point: zero layout transposes, x streamed once.
# ----------------------------------------------------------------------------
def transition_layer_nhwc(x_nhwc, gamma, beta, conv_w, *, tile_h=None, tile_r=None):
    """x_nhwc: (N, H, W, C) f32; conv_w: (Cout, C) (squeezed 1x1 kernel)."""
    N, H, W, C = x_nhwc.shape
    assert H % 2 == 0 and W % 2 == 0, "avg-pool 2x2/2 assumes even H, W"
    Cout = conv_w.shape[0]
    Ho, Wo = H // 2, W // 2
    R = N * H * W                      # elements per channel entering BN stats
    Rout = N * Ho * Wo                 # pooled rows entering the conv
    NH = N * H

    tile_budget, vmem_limit = _vmem_budget()

    # --- tile sizing (generation-aware; double buffering stays within budget) ---
    if tile_h is None:
        cap = max(2, tile_budget // (W * C * 4))
        tile_h = _pick_tile(NH, 2, cap)
    assert NH % tile_h == 0 and tile_h % 2 == 0
    if tile_r is None:
        cap = max(16, tile_budget // (C * 2))          # pooled rows are bf16
        tile_r = _pick_tile(Rout, 16, cap)
    assert Rout % tile_r == 0 and (tile_r % 16 == 0 or tile_r == Rout)

    if tile_h * W * C * 4 * 2 > vmem_limit:
        raise ValueError(
            f"tile_h={tile_h} (fallback) does not fit the VMEM budget; "
            "use shapes with a friendlier N*H divisor")

    x_rows = x_nhwc.reshape(NH, W, C)   # free row-major collapse (no data movement)
    n_tiles = NH // tile_h

    # ---------------- pass A: pool + BN partial statistics (x read once) -------
    pooled, ssum_p, ssq_p = pl.pallas_call(
        pool_stats_kernel,
        grid=(n_tiles,),
        in_specs=[pl.BlockSpec((tile_h, W, C), lambda i: (i, 0, 0))],
        out_specs=(
            pl.BlockSpec((tile_h // 2, Wo, C), lambda i: (i, 0, 0)),
            pl.BlockSpec((1, 1, C), lambda i: (i, 0, 0)),   # per-tile partial
            pl.BlockSpec((1, 1, C), lambda i: (i, 0, 0)),   # per-tile partial
        ),
        out_shape=(
            jax.ShapeDtypeStruct((NH // 2, Wo, C), jnp.bfloat16),
            jax.ShapeDtypeStruct((n_tiles, 1, C), jnp.float32),
            jax.ShapeDtypeStruct((n_tiles, 1, C), jnp.float32),
        ),
        compiler_params=pltpu.CompilerParams(
            dimension_semantics=("parallel",),
            vmem_limit_bytes=vmem_limit),
    )(x_rows)

    # ------- fold BN (training-mode batch stats, biased var) into the conv ----
    ssum = jnp.sum(ssum_p, axis=(0, 1))                    # (C,)
    ssq = jnp.sum(ssq_p, axis=(0, 1))                      # (C,)
    mean = ssum / R
    var = ssq / R - mean * mean                            # biased variance
    scale = gamma * lax.rsqrt(var + EPS)                   # (C,)
    shift = beta - mean * scale                            # (C,)
    w_t = conv_w.astype(jnp.float32).T                     # (C, Cout)
    w_folded = (w_t * scale[:, None]).astype(jnp.bfloat16)  # (C, Cout) bf16
    b_folded = (shift @ w_t).reshape(1, Cout)              # (1, Cout) f32

    pooled2d = pooled.reshape(Rout, C)                     # free row-major collapse

    # ---------------- pass B: folded 1x1 conv over pooled rows ----------------
    out2d = pl.pallas_call(
        conv_bias_kernel,
        grid=(Rout // tile_r,),
        in_specs=[
            pl.BlockSpec((tile_r, C), lambda i: (i, 0)),
            pl.BlockSpec((C, Cout), lambda i: (0, 0)),     # resident weight (bf16)
            pl.BlockSpec((1, Cout), lambda i: (0, 0)),     # resident bias (f32)
        ],
        out_specs=pl.BlockSpec((tile_r, Cout), lambda i: (i, 0)),
        out_shape=jax.ShapeDtypeStruct((Rout, Cout), jnp.float32),
        compiler_params=pltpu.CompilerParams(
            dimension_semantics=("parallel",),
            vmem_limit_bytes=vmem_limit),
    )(pooled2d, w_folded, b_folded)

    return out2d.reshape(N, Ho, Wo, Cout)


# ----------------------------------------------------------------------------
# Drop-in NCHW adapter matching the PyTorch module's layout.
# TODO(synk): in a channels-last DenseNet pipeline these two boundary
# conversions vanish; call transition_layer_nhwc directly so x is streamed
# from HBM exactly once (each conversion is a full extra HBM read+write).
# ----------------------------------------------------------------------------
def transition_layer(x_nchw, gamma, beta, conv_w, *, tile_h=None, tile_r=None):
    x_nhwc = jnp.transpose(x_nchw, (0, 2, 3, 1))
    out_nhwc = transition_layer_nhwc(x_nhwc, gamma, beta, conv_w,
                                     tile_h=tile_h, tile_r=tile_r)
    return jnp.transpose(out_nhwc, (0, 3, 1, 2))


# ----------------------------------------------------------------------------
# Pure-JAX reference mirroring the PyTorch module
# ----------------------------------------------------------------------------
def reference(x_nchw, gamma, beta, conv_w):
    mean = jnp.mean(x_nchw, axis=(0, 2, 3), keepdims=True)
    var = jnp.mean((x_nchw - mean) ** 2, axis=(0, 2, 3), keepdims=True)
    xn = (x_nchw - mean) * lax.rsqrt(var + EPS)
    y = xn * gamma[None, :, None, None] + beta[None, :, None, None]
    conv = jnp.einsum("nchw,oc->nohw", y, conv_w)
    N, Co, H, W = conv.shape
    return conv.reshape(N, Co, H // 2, 2, W // 2, 2).mean(axis=(3, 5))


if __name__ == "__main__":
    key = jax.random.PRNGKey(0)
    kx, kw = jax.random.split(key)

    N, C, H, W = 2, 4, 16, 16
    compression = 0.5
    Cout = int(C * compression)

    x = jax.random.normal(kx, (N, C, H, W), jnp.float32)
    gamma = jnp.ones((C,), jnp.float32)            # BN weight default init
    beta = jnp.zeros((C,), jnp.float32)            # BN bias default init
    conv_w = jax.random.normal(kw, (Cout, C), jnp.float32) * 0.1  # (Cout,C,1,1) squeezed

    # small explicit tiles so the toy run exercises multi-step pipelined grids
    out = jax.block_until_ready(
        transition_layer(x, gamma, beta, conv_w, tile_h=8, tile_r=64))
    ref = reference(x, gamma, beta, conv_w)

    assert out.shape == (N, Cout, H // 2, W // 2), out.shape
    err = float(jnp.max(jnp.abs(out - ref)))
    # tolerance loosened vs. the f32 version: pooled intermediate + folded
    # weight are bf16 on the MXU path (expected precision change, not a bug)
    assert jnp.allclose(out, ref, atol=1e-2, rtol=1e-2), err
    print("KERNEL_OK")
</pallas_src>

<mosaic_0001>
module attributes {stable_mosaic.version = 11 : i64} {
  func.func @pool_stats_kernel(%arg0: i32, %arg1: memref<8x16x4xf32, #tpu.memory_space<vmem>>, %arg2: memref<4x8x4xbf16, #tpu.memory_space<vmem>>, %arg3: memref<1x1x4xf32, #tpu.memory_space<vmem>>, %arg4: memref<1x1x4xf32, #tpu.memory_space<vmem>>) attributes {dimension_semantics = [#tpu.dimension_semantics<parallel>], iteration_bounds = array<i64: 4>, scalar_prefetch = 0 : i64, scratch_operands = 0 : i64, tpu.core_type = #tpu.core_type<tc>, window_params = [{transform_indices = @transform_0, window_bounds = array<i64: 8, 16, 4>}, {transform_indices = @transform_1, window_bounds = array<i64: 4, 8, 4>}, {transform_indices = @transform_2, window_bounds = array<i64: 1, 1, 4>}, {transform_indices = @transform_3, window_bounds = array<i64: 1, 1, 4>}]} {
    %c0 = arith.constant 0 : index
    %c0_0 = arith.constant 0 : index
    %c0_1 = arith.constant 0 : index
    %0 = vector.load %arg1[%c0, %c0_0, %c0_1] : memref<8x16x4xf32, #tpu.memory_space<vmem>>, vector<8x16x4xf32>
    %cst = arith.constant dense<0.000000e+00> : vector<16x4xf32>
    %1 = vector.multi_reduction <add>, %0, %cst [0] : vector<8x16x4xf32> to vector<16x4xf32>
    %cst_2 = arith.constant dense<0.000000e+00> : vector<4xf32>
    %2 = vector.multi_reduction <add>, %1, %cst_2 [0] : vector<16x4xf32> to vector<4xf32>
    %3 = vector.shape_cast %2 : vector<4xf32> to vector<1x4xf32>
    %4 = vector.shape_cast %3 : vector<1x4xf32> to vector<1x1x4xf32>
    %c0_3 = arith.constant 0 : index
    %c0_4 = arith.constant 0 : index
    %c0_5 = arith.constant 0 : index
    %5 = vector.load %arg3[%c0_3, %c0_4, %c0_5] : memref<1x1x4xf32, #tpu.memory_space<vmem>>, vector<1x1x4xf32>
    tpu.vector_store %arg3[%c0_3, %c0_4, %c0_5], %4 {strides = array<i32>} : memref<1x1x4xf32, #tpu.memory_space<vmem>>, vector<1x1x4xf32>,
    %6 = arith.mulf %0, %0 : vector<8x16x4xf32>
    %cst_6 = arith.constant dense<0.000000e+00> : vector<16x4xf32>
    %7 = vector.multi_reduction <add>, %6, %cst_6 [0] : vector<8x16x4xf32> to vector<16x4xf32>
    %cst_7 = arith.constant dense<0.000000e+00> : vector<4xf32>
    %8 = vector.multi_reduction <add>, %7, %cst_7 [0] : vector<16x4xf32> to vector<4xf32>
    %9 = vector.shape_cast %8 : vector<4xf32> to vector<1x4xf32>
    %10 = vector.shape_cast %9 : vector<1x4xf32> to vector<1x1x4xf32>
    %c0_8 = arith.constant 0 : index
    %c0_9 = arith.constant 0 : index
    %c0_10 = arith.constant 0 : index
    %11 = vector.load %arg4[%c0_8, %c0_9, %c0_10] : memref<1x1x4xf32, #tpu.memory_space<vmem>>, vector<1x1x4xf32>
    tpu.vector_store %arg4[%c0_8, %c0_9, %c0_10], %10 {strides = array<i32>} : memref<1x1x4xf32, #tpu.memory_space<vmem>>, vector<1x1x4xf32>,
    %c0_11 = arith.constant 0 : index
    %c0_12 = arith.constant 0 : index
    %c0_13 = arith.constant 0 : index
    %12 = tpu.strided_load %arg1[%c0_11, %c0_12, %c0_13] {strides = array<i32: 1, 2, 1>} : memref<8x16x4xf32, #tpu.memory_space<vmem>>, vector<8x8x4xf32>
    %c0_14 = arith.constant 0 : index
    %c1 = arith.constant 1 : index
    %c0_15 = arith.constant 0 : index
    %13 = tpu.strided_load %arg1[%c0_14, %c1, %c0_15] {strides = array<i32: 1, 2, 1>} : memref<8x16x4xf32, #tpu.memory_space<vmem>>, vector<8x8x4xf32>
    %14 = arith.addf %12, %13 : vector<8x8x4xf32>
    %15 = vector.shape_cast %14 : vector<8x8x4xf32> to vector<4x2x8x4xf32>
    %16 = vector.extract_strided_slice %15 {offsets = [0, 0, 0, 0], sizes = [4, 1, 8, 4], strides = [1, 1, 1, 1]} : vector<4x2x8x4xf32> to vector<4x1x8x4xf32>
    %17 = vector.shape_cast %16 : vector<4x1x8x4xf32> to vector<4x8x4xf32>
    %18 = vector.extract_strided_slice %15 {offsets = [0, 1, 0, 0], sizes = [4, 1, 8, 4], strides = [1, 1, 1, 1]} : vector<4x2x8x4xf32> to vector<4x1x8x4xf32>
    %19 = vector.shape_cast %18 : vector<4x1x8x4xf32> to vector<4x8x4xf32>
    %20 = arith.addf %17, %19 : vector<4x8x4xf32>
    %cst_16 = arith.constant 2.500000e-01 : f32
    %21 = vector.broadcast %cst_16 : f32 to vector<4x8x4xf32>
    %22 = arith.mulf %21, %20 : vector<4x8x4xf32>
    %23 = arith.truncf %22 : vector<4x8x4xf32> to vector<4x8x4xbf16>
    %c0_17 = arith.constant 0 : index
    %c0_18 = arith.constant 0 : index
    %c0_19 = arith.constant 0 : index
    %24 = vector.load %arg2[%c0_17, %c0_18, %c0_19] : memref<4x8x4xbf16, #tpu.memory_space<vmem>>, vector<4x8x4xbf16>
    tpu.vector_store %arg2[%c0_17, %c0_18, %c0_19], %23 {strides = array<i32>} : memref<4x8x4xbf16, #tpu.memory_space<vmem>>, vector<4x8x4xbf16>,
    return
  }
  func.func @transform_0(%arg0: i32) -> (i32, i32, i32) {
    %c0_i32 = arith.constant 0 : i32
    %c0_i32_0 = arith.constant 0 : i32
    %c0_i32_1 = arith.constant 0 : i32
    return %arg0, %c0_i32, %c0_i32_0 : i32, i32, i32
  }
  func.func @transform_1(%arg0: i32) -> (i32, i32, i32) {
    %c0_i32 = arith.constant 0 : i32
    %c0_i32_0 = arith.constant 0 : i32
    %c0_i32_1 = arith.constant 0 : i32
    return %arg0, %c0_i32, %c0_i32_0 : i32, i32, i32
  }
  func.func @transform_2(%arg0: i32) -> (i32, i32, i32) {
    %c0_i32 = arith.constant 0 : i32
    %c0_i32_0 = arith.constant 0 : i32
    %c0_i32_1 = arith.constant 0 : i32
    return %arg0, %c0_i32, %c0_i32_0 : i32, i32, i32
  }
  func.func @transform_3(%arg0: i32) -> (i32, i32, i32) {
    %c0_i32 = arith.constant 0 : i32
    %c0_i32_0 = arith.constant 0 : i32
    %c0_i32_1 = arith.constant 0 : i32
    return %arg0, %c0_i32, %c0_i32_0 : i32, i32, i32
  }
}

</mosaic_0001>

<bundles_post_ra>
// kernel: tpu_custom_call.1
= control target key start
LH: loop header
LB: loop body
LE: loop exit
PB: predicated region body
PF: predicated region fallthrough
CT: control target
= control target key end

     0   :  { %9 = vsyncpa [#allocation3], 0  ;;  %s928_s0 = inlined_call_operand.vmem [shape: f32[32,16,4], index: 0, kind: input, shape index: {}]   ;;  %s929_s1 = inlined_call_operand.vmem [shape: bf16[16,8,4], index: 1, kind: output, shape index: {0}]   ;;  %s930_s2 = inlined_call_operand.hbm [shape: f32[4,1,4], index: 2, kind: output, shape index: {1}]   ;;  %s931_s3 = inlined_call_operand.hbm [shape: f32[4,1,4], index: 3, kind: output, shape index: {2}]  }
   0x1   :  { %11 = vsyncpa [#allocation3 + $0x1], 0 }
   0x2   :  { %12 = vsyncpa [#allocation5], 0 }
   0x3   :  { %14 = vsyncpa [#allocation5 + $0x1], 0  ;;  %s700_s12 = smov 0   ;;  %s702_s13 = smov 0  }
   0x4   :  { %s704_s14 = smov 0   ;;  %s706_s15 = smov 0  }
   0x5 LB: > { %s721_s16 = sadd.s32 4294967295, %s676_s15   ;;  %s513_s17 = sadd.s32 4294967294, %s676_s15   ;;  %s676_s15 = sphi %s706_s15, %s938_s15   ;;  %s672_s14 = sphi %s704_s14, %s937_s14   ;;  %s668_s13 = sphi %s702_s13, %s936_s13   ;;  %s664_s12 = sphi %s700_s12, %s935_s12  }
   0x6   : > { %s725_s18 = sadd.s32 1, %s676_s15   ;;  %s79_s19 = sadd.s32 1, %s672_s14 }
   0x7   : > { %s76_s20 = ssub.s32 %s676_s15, %s725_s18  ;;  %p89_p0 = scmp.ne.s32.totalorder %s672_s14, %s668_s13 }
   0x8   : > { %p77_p1 = scmp.eq.s32.totalorder %s76_s20, 0  ;;  %p90_p2 = scmp.eq.s32.totalorder %s721_s16, 3 }
   0x9   : > { %p95_p3 = scmp.ne.s32.totalorder %s668_s13, %s664_s12  ;;  %p96_p4 = scmp.eq.s32.totalorder %s513_s17, 3 }
   0xa   : > { %s736_s21 = scalar_select %p77_p1, %s672_s14, %s79_s19  }
   0xb   : > { %p738_p5 = por %p90_p2, %p89_p0  ;;  %p742_p6 = por %p96_p4, %p95_p3 }
   0xc   : > { %p516_p7 = scmp.ge.s32.totalorder %s676_s15, 1  ;;  %p150_p8 = scmp.lt.s32.totalorder %s676_s15, 5 }
   0xe   : > { %p151_p9 = pnand %p516_p7, %p150_p8 }
   0xf   : > { %s517_s24 = sshll.u32 (!%p151_p9), %s721_s16, 3  ;;  %s520_s29 = sshll.u32 (!%p151_p9), %s721_s16, 2 }
  0x10   : > { %154 = sbr.rel (%p151_p9) target bundleno = 92 (0x5c), region = 24  ;;  %p184_p10 = scmp.lt.s32.totalorder (!%p151_p9), %s517_s24, 31 }
  0x11   : > { %p793_p11 = scmp.lt.s32.totalorder (!%p151_p9), %s520_s29, 15  ;;  %s836_s4 = sand.u32 (!%p151_p9), 1, %s668_s13  }
  0x12   : > { %s176_s9 = scalar_lea.vmem (!%p151_p9), [#allocation2], %s836_s4  ;;  %s537_s11 = sshll.u32 (!%p151_p9), %s721_s16, 4 }
  0x13   : > { %s392_s10 = sshll.u32 (!%p151_p9), %s176_s9, 4  ;;  %s861_s20 = scalar_lea.hbm (!%p151_p9), %s930_s2, %s537_s11  ;;  %s852_s10 = int_to_ptr.vmem [resolvable:$true] %s392_s10 }
  0x14   : > { %s678_s26 = smov (!%p151_p9), [#allocation2]  }
  0x15   : > { %s940_s24 = smov (!%p184_p10, %s517_s24), 31  ;;  %vm212_vm0 = vcmask 31744   ;;  %s942_s29 = smov (!%p793_p11, %s520_s29), 15  ;;  %vm361_vm1 = vcmask 27648   ;;  %vm252_vm2 = vcmask 24576  }
  0x16   : > { %s541_s25 = sshll.u32 %s940_s24, 4  ;;  %s521_s5 = sshll.u32 %s942_s29, 2 }
  0x17   : > { %s752_s28 = scalar_lea.vmem %s928_s0, %s541_s25  ;;  %s194_s8 = scalar_lea.vmem %s929_s1, %s521_s5 }
  0x18   : > { %v196_v0 = vld [vmem:[%s752_s28] sm:$0xff]  ;;  %v197_v1 = vld [vmem:[%s752_s28 + $0x8] sm:$0xff]  ;;  %v198_v2 = vld [vmem:[%s752_s28 + $0x10] sm:$0xff]  ;;  %s372_s24 = scalar_lea.sflag [#allocation3], %s836_s4  ;;  %s586_s25 = scalar_lea.vmem %s852_s10, 16 }
  0x19   : > { %v199_v3 = vld [vmem:[%s752_s28 + $0x18] sm:$0xff]  ;;  %v200_v4 = vld [vmem:[%s752_s28 + $0x20] sm:$0xff]  ;;  %v201_v5 = vld [vmem:[%s752_s28 + $0x28] sm:$0xff]  ;;  %v213_v6 = vsel %vm212_vm0, %v196_v0, 0.0  ;;  %v214_v7 = vsel %vm212_vm0, %v198_v2, 0.0  ;;  %v228_v8 = vsel %vm212_vm0, %v197_v1, 0.0  ;;  %v254_v19 = vmul.f32 %v196_v0, %v196_v0  ;;  %p587_p12 = scmp.ne.s32.totalorder %s852_s10, %s586_s25 }
  0x1a   : > { %v202_v9 = vld [vmem:[%s752_s28 + $0x30] sm:$0xff]  ;;  %v215_v10 = vadd.f32 %v214_v7, %v213_v6  ;;  %v216_v11 = vsel %vm212_vm0, %v200_v4, 0.0  ;;  %v229_v12 = vsel %vm212_vm0, %v199_v3, 0.0  ;;  %v231_v13 = vsel %vm212_vm0, %v201_v5, 0.0  ;;  %v203_v14 = vld [vmem:[%s752_s28 + $0x38] sm:$0xff]  ;;  %v204_v15 = vld [vmem:[%s752_s28 + $0x40] sm:$0xff] }
  0x1b   : > { %v206_v16 = vld [vmem:[%s752_s28 + $0x50] sm:$0xff]  ;;  %v218_v17 = vsel %vm212_vm0, %v202_v9, 0.0  ;;  %v230_v18 = vadd.f32 %v229_v12, %v228_v8  ;;  %v205_v20 = vld [vmem:[%s752_s28 + $0x48] sm:$0xff]  ;;  %v207_v21 = vld [vmem:[%s752_s28 + $0x58] sm:$0xff]  ;;  %v220_v24 = vsel %vm212_vm0, %v204_v15, 0.0  ;;  %v233_v26 = vsel %vm212_vm0, %v203_v14, 0.0  ;;  %p588_p13 = pnand %p587_p12, %p738_p5 }
  0x1c   : > { %v208_v22 = vld [vmem:[%s752_s28 + $0x60] sm:$0xff]  ;;  %v217_v23 = vadd.f32 %v216_v11, %v215_v10  ;;  %v222_v25 = vsel %vm212_vm0, %v206_v16, 0.0  ;;  %v209_v27 = vld [vmem:[%s752_s28 + $0x68] sm:$0xff]  ;;  %v210_v28 = vld [vmem:[%s752_s28 + $0x70] sm:$0xff]  ;;  %v235_v32 = vsel %vm212_vm0, %v205_v20, 0.0  ;;  %v237_v33 = vsel %vm212_vm0, %v207_v21, 0.0 }
  0x1d   : > { %v211_v29 = vld [vmem:[%s752_s28 + $0x78] sm:$0xff]  ;;  %v224_v30 = vsel %vm212_vm0, %v208_v22, 0.0  ;;  %v232_v31 = vadd.f32 %v231_v13, %v230_v18  ;;  %v226_v35 = vsel %vm212_vm0, %v210_v28, 0.0  ;;  %v239_v36 = vsel %vm212_vm0, %v209_v27, 0.0  ;;  %v523_v10 = vld [vmem:[%s752_s28 + $0x20] ss:$2 sm:$0xff]  ;;  %p589_p0 = pneg %p588_p13 }
  0x1e   : > { %v219_v34 = vadd.f32 %v218_v17, %v217_v23  ;;  %v241_v37 = vsel %vm212_vm0, %v211_v29, 0.0  ;;  %v255_v39 = vmul.f32 %v197_v1, %v197_v1  ;;  %v256_v40 = vmul.f32 %v198_v2, %v198_v2  ;;  %v310_v2 = vld [vmem:[%s752_s28] ss:$2 sm:$0xff]  ;;  %v522_v8 = vld [vmem:[%s752_s28 + $0x10] ss:$2 sm:$0xff]  ;;  %s590_s27 = sshll.u32 %s678_s26, 4  ;;  %s591_s27 = int_to_ptr.vmem [resolvable:$false] %s590_s27 }
  0x1f   : > { %v234_v38 = vadd.f32 %v233_v26, %v232_v31  ;;  %v257_v41 = vmul.f32 %v199_v3, %v199_v3  ;;  %v258_v43 = vmul.f32 %v200_v4, %v200_v4  ;;  %v259_v44 = vmul.f32 %v201_v5, %v201_v5  ;;  %v529_v3 = vld [vmem:[%s752_s28 + $0x1] ss:$2 sm:$0xff]  ;;  %v524_v11 = vld [vmem:[%s752_s28 + $0x30] ss:$2 sm:$0xff]  ;;  %v532_v13 = vld [vmem:[%s752_s28 + $0x31] ss:$2 sm:$0xff]  ;;  %p593_p1 = scmp.lt.s32.totalorder %s852_s10, %s591_s27 }
  0x20   : > { %v221_v42 = vadd.f32 %v220_v24, %v219_v34  ;;  %v260_v45 = vmul.f32 %v202_v9, %v202_v9  ;;  %v261_v47 = vmul.f32 %v203_v14, %v203_v14  ;;  %v262_v48 = vmul.f32 %v204_v15, %v204_v15  ;;  %v530_v9 = vld [vmem:[%s752_s28 + $0x11] ss:$2 sm:$0xff]  ;;  %v531_v12 = vld [vmem:[%s752_s28 + $0x21] ss:$2 sm:$0xff]  ;;  %v525_v14 = vld [vmem:[%s752_s28 + $0x40] ss:$2 sm:$0xff] }
  0x21   : > { %v236_v46 = vadd.f32 %v235_v32, %v234_v38  ;;  %v263_v49 = vmul.f32 %v205_v20, %v205_v20  ;;  %v264_v51 = vmul.f32 %v206_v16, %v206_v16  ;;  %v265_v52 = vmul.f32 %v207_v21, %v207_v21  ;;  %v533_v24 = vld [vmem:[%s752_s28 + $0x41] ss:$2 sm:$0xff] }
  0x22   : > { %v223_v50 = vadd.f32 %v222_v25, %v221_v42  ;;  %v266_v53 = vmul.f32 %v208_v22, %v208_v22  ;;  %v787_v55 = vmul.f32 %v209_v27, %v209_v27  ;;  %v270_v56 = vsel %vm212_vm0, %v254_v19, 0.0  ;;  %v526_v19 = vld [vmem:[%s752_s28 + $0x50] ss:$2 sm:$0xff]  ;;  %v534_v25 = vld [vmem:[%s752_s28 + $0x51] ss:$2 sm:$0xff] }
  0x23   : > { %v238_v54 = vadd.f32 %v237_v33, %v236_v46  ;;  %v271_v57 = vsel %vm212_vm0, %v256_v40, 0.0  ;;  %v268_v59 = vmul.f32 %v210_v28, %v210_v28  ;;  %v273_v61 = vsel %vm212_vm0, %v258_v43, 0.0 }
  0x24   : > { %v225_v58 = vadd.f32 %v224_v30, %v223_v50  ;;  %v272_v60 = vadd.f32 %v271_v57, %v270_v56  ;;  %v798_v63 = vmul.f32 %v211_v29, %v211_v29  ;;  %v275_v0 = vsel %vm212_vm0, %v260_v45, 0.0  ;;  %v527_v30 = vld [vmem:[%s752_s28 + $0x60] ss:$2 sm:$0xff] }
  0x25   : > { %v240_v62 = vadd.f32 %v239_v36, %v238_v54  ;;  %v277_v1 = vsel %vm212_vm0, %v262_v48, 0.0  ;;  %v279_v6 = vsel %vm212_vm0, %v264_v51, 0.0  ;;  %v285_v7 = vsel %vm212_vm0, %v255_v39, 0.0  ;;  %v535_v36 = vld [vmem:[%s752_s28 + $0x61] ss:$2 sm:$0xff] }
  0x26   : > { %v227_v4 = vadd.f32 %v226_v35, %v225_v58  ;;  %v274_v5 = vadd.f32 %v273_v61, %v272_v60  ;;  %v281_v16 = vsel %vm212_vm0, %v266_v53, 0.0  ;;  %v286_v17 = vsel %vm212_vm0, %v257_v41, 0.0  ;;  %v528_v35 = vld [vmem:[%s752_s28 + $0x70] ss:$2 sm:$0xff] }
  0x27   : > { %v242_v15 = vadd.f32 %v241_v37, %v240_v62  ;;  %v288_v18 = vsel %vm212_vm0, %v259_v44, 0.0  ;;  %v283_v22 = vsel %vm212_vm0, %v268_v59, 0.0  ;;  %v287_v23 = vadd.f32 %v286_v17, %v285_v7  ;;  %v536_v37 = vld [vmem:[%s752_s28 + $0x71] ss:$2 sm:$0xff]  ;;  %s592_s28 = scalar_lea.vmem %s591_s27, 32 }
  0x28   : > { %v243_v20 = vsel %vm212_vm0, %v227_v4, 0.0  ;;  %v276_v21 = vadd.f32 %v275_v0, %v274_v5  ;;  %v290_v27 = vsel %vm212_vm0, %v261_v47, 0.0  ;;  %v292_v28 = vsel %vm212_vm0, %v263_v49, 0.0  ;;  %p594_p2 = scmp.lt.s32.totalorder %s592_s28, %s586_s25 }
  0x29   : > { %v244_v26 = vsel %vm212_vm0, %v242_v15, 0.0  ;;  %v294_v29 = vsel %vm212_vm0, %v265_v52, 0.0  ;;  %v289_v33 = vadd.f32 %v288_v18, %v287_v23  ;;  %v341_v34 = vadd.f32 %v529_v3, %v310_v2 }
  0x2a   : > { %v245_v31 = vadd.f32 %v244_v26, %v243_v20  ;;  %v278_v32 = vadd.f32 %v277_v1, %v276_v21  ;;  %v342_v38 = vadd.f32 %v530_v9, %v522_v8  ;;  %v343_v39 = vadd.f32 %v531_v12, %v523_v10  ;;  %p595_p3 = por %p594_p2, %p593_p1 }
  0x2b   : > { %v344_v40 = vadd.f32 %v532_v13, %v524_v11  ;;  %v345_v41 = vadd.f32 %v533_v24, %v525_v14  ;;  %v291_v44 = vadd.f32 %v290_v27, %v289_v33  ;;  %v346_v45 = vadd.f32 %v534_v25, %v526_v19 }
  0x2c   : > { %v246_v42 = vrot.slane %v245_v31, 4  ;;  %v280_v43 = vadd.f32 %v279_v6, %v278_v32  ;;  %v349_v46 = vadd.f32 %v342_v38, %v341_v34  ;;  %v347_v48 = vadd.f32 %v535_v36, %v527_v30  ;;  %p596_p4 = pnand %p595_p3, %p589_p0 }
  0x2d   : > { %v350_v47 = vadd.f32 %v344_v40, %v343_v39  ;;  %v348_v49 = vadd.f32 %v536_v37, %v528_v35  ;;  %v293_v52 = vadd.f32 %v292_v28, %v291_v44  ;;  %v351_v53 = vadd.f32 %v346_v45, %v345_v41 }
  0x2e   : > { %v247_v50 = vadd.f32 %v246_v42, %v245_v31  ;;  %v282_v51 = vadd.f32 %v281_v16, %v280_v43  ;;  %v296_v54 = vsel %vm212_vm0, %v787_v55, 0.0  ;;  %v353_v56 = vmul.f32 0.25, %v349_v46 }
  0x2f   : > { %v354_v57 = vmul.f32 0.25, %v350_v47  ;;  %v352_v58 = vadd.f32 %v348_v49, %v347_v48  ;;  %v295_v61 = vadd.f32 %v294_v29, %v293_v52  ;;  %v355_v62 = vmul.f32 0.25, %v351_v53 }
  0x30   : > { %v248_v59 = vrot.slane %v247_v50, 2  ;;  %v284_v60 = vadd.f32 %v283_v22, %v282_v51  ;;  %v298_v0 = vsel %vm212_vm0, %v798_v63, 0.0  ;;  %v357_v1 = vpack.c.bf16 %v353_v56, %v353_v56 }
  0x31   : > { %v358_v2 = vpack.c.bf16 %v354_v57, %v354_v57  ;;  %v356_v3 = vmul.f32 0.25, %v352_v58  ;;  %v297_v55 = vadd.f32 %v296_v54, %v295_v61  ;;  %v359_v5 = vpack.c.bf16 %v355_v62, %v355_v62 }
  0x32   : > { %v249_v4 = vadd.f32 %v248_v59, %v247_v50  ;;  %362 = vst.msk [vmem:[%s194_s8] sm:$0xf] %vm361_vm1, %v357_v1  ;;  %v300_v63 = vsel %vm212_vm0, %v284_v60, 0.0 }
  0x33   : > { %363 = vst.msk [vmem:[%s194_s8 + $0x4] sm:$0xf] %vm361_vm1, %v358_v2  ;;  %v360_v6 = vpack.c.bf16 %v356_v3, %v356_v3  ;;  %v299_v8 = vadd.f32 %v298_v0, %v297_v55  ;;  %364 = vst.msk [vmem:[%s194_s8 + $0x8] sm:$0xf] %vm361_vm1, %v359_v5 }
  0x34   : > { %v250_v7 = vrot.slane %v249_v4, 1 }
  0x35   : > { %365 = vst.msk [vmem:[%s194_s8 + $0xc] sm:$0xf] %vm361_vm1, %v360_v6  ;;  %v301_v10 = vsel %vm212_vm0, %v299_v8, 0.0 }
  0x36   : > { %v251_v9 = vadd.f32 %v250_v7, %v249_v4  ;;  %v302_v11 = vadd.f32 %v301_v10, %v300_v63 }
  0x38   : > { %253 = vst.msk [vmem:[%s176_s9] sm:$0x1] %vm252_vm2, %v251_v9  ;;  %v303_v12 = vrot.slane %v302_v11, 4 }
  0x39   : > { %599 = shalt.err (!%p596_p4)
}
  0x3a   : > { %s600_s29 = scalar_lea.hbm %s861_s20, 16  ;;  %s604_s6 = scalar_lea.hbm %s930_s2, 64 }
  0x3b   : > { %p601_p7 = scmp.ne.s32.totalorder %s861_s20, %s600_s29  ;;  %p605_p10 = scmp.lt.s32.totalorder %s861_s20, %s930_s2 }
  0x3c   : > { %p606_p11 = scmp.lt.s32.totalorder %s604_s6, %s600_s29 }
  0x3d   : > { %p602_p8 = pnand %p601_p7, %p738_p5 }
  0x3e   : > { %p607_p12 = por %p606_p11, %p605_p10 }
  0x3f   : > { %p603_p9 = pneg %p602_p8 }
  0x41   : > { %p608_p13 = pnand %p607_p12, %p603_p9 }
  0x43   : > { %611 = shalt.err (!%p608_p13)
}
  0x44   : > { %542 = dma.vmem_to_hbm [thread:$0]  (%p738_p5), %s852_s10, 16, %s861_s20, %s372_s24   ;;  %v304_v13 = vadd.f32 %v303_v12, %v302_v11 }
  0x45   : > { %s182_s9 = scalar_lea.vmem [#allocation4], %s836_s4  ;;  %s403_s26 = scalar_lea.hbm %s931_s3, %s537_s11 }
  0x46   : > { %v305_v14 = vrot.slane %v304_v13, 2  ;;  %s405_s17 = sshll.u32 %s182_s9, 4  ;;  %s376_s10 = scalar_lea.sflag [#allocation5], %s836_s4  ;;  %s886_s17 = int_to_ptr.vmem [resolvable:$true] %s405_s17 }
  0x47   : > { %s612_s20 = scalar_lea.vmem %s886_s17, 16  ;;  %s679_s24 = smov [#allocation4]  }
  0x48   : > { %v306_v15 = vadd.f32 %v305_v14, %v304_v13  ;;  %p613_p0 = scmp.ne.s32.totalorder %s886_s17, %s612_s20  ;;  %s616_s27 = sshll.u32 %s679_s24, 4  ;;  %s617_s27 = int_to_ptr.vmem [resolvable:$false] %s616_s27 }
  0x49   : > { %s618_s28 = scalar_lea.vmem %s617_s27, 32  ;;  %p619_p3 = scmp.lt.s32.totalorder %s886_s17, %s617_s27 }
  0x4a   : > { %v307_v16 = vrot.slane %v306_v15, 1  ;;  %p614_p1 = pnand %p613_p0, %p738_p5  ;;  %p620_p4 = scmp.lt.s32.totalorder %s618_s28, %s612_s20 }
  0x4c   : > { %v308_v17 = vadd.f32 %v307_v16, %v306_v15  ;;  %p615_p2 = pneg %p614_p1  ;;  %p621_p7 = por %p620_p4, %p619_p3 }
  0x4e   : > { %309 = vst.msk [vmem:[%s182_s9] sm:$0x1] %vm252_vm2, %v308_v17  ;;  %p622_p8 = pnand %p621_p7, %p615_p2 }
  0x50   : > { %625 = shalt.err (!%p622_p8)
}
  0x51   : > { %s626_s16 = scalar_lea.hbm %s403_s26, 16  ;;  %s630_s29 = scalar_lea.hbm %s931_s3, 64 }
  0x52   : > { %p627_p9 = scmp.ne.s32.totalorder %s403_s26, %s626_s16  ;;  %p631_p12 = scmp.lt.s32.totalorder %s403_s26, %s931_s3 }
  0x53   : > { %p632_p13 = scmp.lt.s32.totalorder %s630_s29, %s626_s16 }
  0x54   : > { %p628_p10 = pnand %p627_p9, %p738_p5 }
  0x55   : > { %p633_p0 = por %p632_p13, %p631_p12 }
  0x56   : > { %p629_p11 = pneg %p628_p10 }
  0x58   : > { %p634_p1 = pnand %p633_p0, %p629_p11 }
  0x5a   : > { %637 = shalt.err (!%p634_p1)
}
  0x5b   : > { %543 = dma.vmem_to_hbm [thread:$0]  (%p738_p5), %s886_s17, 16, %s403_s26, %s376_s10  }
  0x5c PF: > { %p553_p2 = scmp.ge.s32.totalorder %s676_s15, 2  ;;  %s425_s6 = sand.u32 1, %s664_s12  }
  0x5d   : > { %s426_s7 = scalar_lea.sflag [#allocation3], %s425_s6 }
  0x5e   : > { %p547_p3 = pnand %p553_p2, %p742_p6 }
  0x60   : > { %p548_p4 = pneg %p547_p3 }
  0x62   : > { %655 = dma.done.wait (%p548_p4), %s426_s7, 16  }
  0x63   : > { %657 = vsyncadd (%p548_p4), %s426_s7, 4294967280  ;;  %s434_s8 = scalar_lea.sflag [#allocation5], %s425_s6 }
  0x64   : > { %659 = dma.done.wait (%p548_p4), %s434_s8, 16  }
  0x65   : > { %661 = vsyncadd (%p548_p4), %s434_s8, 4294967280  ;;  %p17_p5 = scmp.ge.s32.totalorder %s725_s18, 6   ;;  %s935_s12 = smov %s668_s13 }
  0x66   : > { %s936_s13 = smov %s672_s14  ;;  %s937_s14 = smov %s736_s21 }
  0x67   : > { %s938_s15 = smov %s725_s18  ;;  %19 = sbr.rel (!%p17_p5) target bundleno = 5 (0x5), region = 103 }
  0x6c   :  { %438 = vsyncpa [#allocation3], 1 }
  0x6d   :  { %440 = vsyncpa [#allocation3 + $0x1], 1 }
  0x6e   :  { %441 = vsyncpa [#allocation5], 1 }
  0x6f   :  { %443 = vsyncpa [#allocation5 + $0x1], 1 }

</bundles_post_ra>
